<compile_context>
chip_gen: v7x
topology: tpu7x:2x2x1
jax: 0.10.0
libtpu: 0.0.40
codegen_flags: <defaults>
</compile_context>

<pallas_src>
import jax
import jax.numpy as jnp
from jax.experimental import pallas as pl
from jax.experimental.pallas import tpu as pltpu

# ---- model hyperparameters (small, consistent with the module's structure) ----
LATENT_DIM = 8
N_INPUTS = 4
BASE_FEAT = 8
NOUT = 4
NLABELS = 8
BATCH = 2

D_IN = LATENT_DIM * N_INPUTS          # 32
H1 = N_INPUTS * BASE_FEAT * 4         # 128
H2 = N_INPUTS * BASE_FEAT * 2         # 64
D_OUT = NOUT * NLABELS                # 32
L1 = BASE_FEAT * 4                    # per-group width after Linear 1
L2 = BASE_FEAT * 2                    # per-group width after Linear 2

NEG_SLOPE = 0.01                       # nn.LeakyReLU default
IN_EPS = 1e-5                          # nn.InstanceNorm1d default


def _leaky_relu(h):
    return jnp.where(h > 0, h, NEG_SLOPE * h)


def _instance_norm_mxu(h, pool):
    """InstanceNorm1d statistics via MXU pooling matmuls.

    `pool` is a constant block-diagonal (H, H) matrix with 1/L inside each
    group's LxL block, so `h @ pool` broadcasts each (batch, group) mean across
    that group's features, and `(h*h) @ pool` gives E[h^2]. Biased variance
    (matches nn.InstanceNorm1d), eps inside the rsqrt. Affine is folded into
    the following Linear, so none is applied here.
    """
    mean = jnp.dot(h, pool, preferred_element_type=jnp.float32)
    meansq = jnp.dot(h * h, pool, preferred_element_type=jnp.float32)
    var = meansq - mean * mean
    return (h - mean) * jax.lax.rsqrt(var + IN_EPS)


def classifier_kernel(x_ref,
                      w1_ref, b1_ref, p1_ref,
                      w2_ref, b2_ref, p2_ref,
                      w3_ref, b3_ref,
                      o_ref):
    x = x_ref[...]

    # Linear 1 + LeakyReLU + InstanceNorm1d (stats only; affine folded into W2)
    h = jnp.dot(x, w1_ref[...], preferred_element_type=jnp.float32) + b1_ref[...]
    h = _leaky_relu(h)
    h = _instance_norm_mxu(h, p1_ref[...])

    # Linear 2 (affine-folded) + LeakyReLU + InstanceNorm1d (affine folded into W3)
    h = jnp.dot(h, w2_ref[...], preferred_element_type=jnp.float32) + b2_ref[...]
    h = _leaky_relu(h)
    h = _instance_norm_mxu(h, p2_ref[...])

    # Linear 3 (affine-folded) + Sigmoid
    h = jnp.dot(h, w3_ref[...], preferred_element_type=jnp.float32) + b3_ref[...]
    o_ref[...] = jax.nn.sigmoid(h)


def _pool_matrix(n_groups, L):
    """Block-diagonal (n_groups*L, n_groups*L) averaging matrix: 1/L per block."""
    return jnp.kron(jnp.eye(n_groups, dtype=jnp.float32),
                    jnp.full((L, L), 1.0 / float(L), jnp.float32))


def classifier_forward(x, params):
    """x: (B, latent_dim * n_inputs) float32 -> (B, nout, nlabels) float32."""
    b = x.shape[0]
    (w1, b1, g1, be1, w2, b2, g2, be2, w3, b3) = params

    # Host-side constant prep (folded into the jit; all tiny):
    # 1) block-diagonal pooling matrices for InstanceNorm stats on the MXU
    p1 = _pool_matrix(N_INPUTS, L1)                     # (H1, H1)
    p2 = _pool_matrix(N_INPUTS, L2)                     # (H2, H2)
    # 2) fold InstanceNorm affine (per-channel gamma/beta, broadcast per feature)
    #    into the *next* Linear:  y = n*g + be ; y@W + b = n@(diag(g)W) + (be@W + b)
    g1v = jnp.repeat(g1, L1)                            # (H1,)
    be1v = jnp.repeat(be1, L1)
    g2v = jnp.repeat(g2, L2)                            # (H2,)
    be2v = jnp.repeat(be2, L2)
    w2f = g1v[:, None] * w2
    b2f = b2 + be1v @ w2
    w3f = g2v[:, None] * w3
    b3f = b3 + be2v @ w3

    # No grid: single-shot kernel, everything resident in VMEM (total < 100 KiB).
    # If batch ever grows large, tile the batch with grid=(cdiv(B, TB),),
    # x/out BlockSpecs indexed by i, weights pinned with lambda i: (0, 0) and
    # dimension_semantics=("parallel",).
    vmem = pl.BlockSpec(memory_space=pltpu.MemorySpace.VMEM)

    out_flat = pl.pallas_call(
        classifier_kernel,
        out_shape=jax.ShapeDtypeStruct((b, D_OUT), jnp.float32),
        in_specs=[vmem] * 9,
        out_specs=vmem,
    )(x,
      w1, b1.reshape(1, H1), p1,
      w2f, b2f.reshape(1, H2), p2,
      w3f, b3f.reshape(1, D_OUT))

    return out_flat.reshape(b, NOUT, NLABELS)


def init_params(key):
    """Deterministic synthetic params (PyTorch-like uniform(-1/sqrt(fan_in)) linears,
    InstanceNorm affine weight=1, bias=0 as in nn.InstanceNorm1d defaults)."""
    ks = jax.random.split(key, 6)

    def lin(kw, kb, fan_in, fan_out):
        bound = 1.0 / jnp.sqrt(float(fan_in))
        w = jax.random.uniform(kw, (fan_in, fan_out), jnp.float32, -bound, bound)
        bvec = jax.random.uniform(kb, (fan_out,), jnp.float32, -bound, bound)
        return w, bvec

    w1, b1 = lin(ks[0], ks[1], D_IN, H1)
    w2, b2 = lin(ks[2], ks[3], H1, H2)
    w3, b3 = lin(ks[4], ks[5], H2, D_OUT)
    g1 = jnp.ones((N_INPUTS,), jnp.float32)
    be1 = jnp.zeros((N_INPUTS,), jnp.float32)
    g2 = jnp.ones((N_INPUTS,), jnp.float32)
    be2 = jnp.zeros((N_INPUTS,), jnp.float32)
    return (w1, b1, g1, be1, w2, b2, g2, be2, w3, b3)


def reference_forward(x, params):
    """Pure-JAX reference mirroring the PyTorch nn.Sequential exactly."""
    (w1, b1, g1, be1, w2, b2, g2, be2, w3, b3) = params
    b = x.shape[0]

    def inorm(h, L, gamma, beta):
        h3 = h.reshape(b, N_INPUTS, L)
        mu = h3.mean(axis=-1, keepdims=True)
        var = ((h3 - mu) ** 2).mean(axis=-1, keepdims=True)
        h3 = (h3 - mu) / jnp.sqrt(var + IN_EPS)
        h3 = h3 * gamma[None, :, None] + beta[None, :, None]
        return h3.reshape(b, N_INPUTS * L)

    h = x @ w1 + b1
    h = jnp.where(h > 0, h, NEG_SLOPE * h)
    h = inorm(h, L1, g1, be1)
    h = h @ w2 + b2
    h = jnp.where(h > 0, h, NEG_SLOPE * h)
    h = inorm(h, L2, g2, be2)
    h = h @ w3 + b3
    return jax.nn.sigmoid(h).reshape(b, NOUT, NLABELS)


if __name__ == "__main__":
    key = jax.random.PRNGKey(0)
    kx, kp = jax.random.split(key)
    x = jax.random.normal(kx, (BATCH, D_IN), jnp.float32)
    params = init_params(kp)

    out = classifier_forward(x, params)
    out = jax.block_until_ready(out)

    ref = reference_forward(x, params)
    assert out.shape == (BATCH, NOUT, NLABELS)
    assert jnp.allclose(out, ref, atol=1e-5, rtol=1e-5), "mismatch vs reference"

    print("KERNEL_OK")
</pallas_src>

<mosaic_0001>
module attributes {stable_mosaic.version = 11 : i64} {
  func.func @classifier_kernel(%arg0: memref<2x32xf32, #tpu.memory_space<vmem>>, %arg1: memref<32x128xf32, #tpu.memory_space<vmem>>, %arg2: memref<1x128xf32, #tpu.memory_space<vmem>>, %arg3: memref<128x128xf32, #tpu.memory_space<vmem>>, %arg4: memref<128x64xf32, #tpu.memory_space<vmem>>, %arg5: memref<1x64xf32, #tpu.memory_space<vmem>>, %arg6: memref<64x64xf32, #tpu.memory_space<vmem>>, %arg7: memref<64x32xf32, #tpu.memory_space<vmem>>, %arg8: memref<1x32xf32, #tpu.memory_space<vmem>>, %arg9: memref<2x32xf32, #tpu.memory_space<vmem>>) attributes {dimension_semantics = [], scalar_prefetch = 0 : i64, scratch_operands = 0 : i64, tpu.core_type = #tpu.core_type<tc>} {
    %c0 = arith.constant 0 : index
    %c0_0 = arith.constant 0 : index
    %0 = vector.load %arg0[%c0, %c0_0] : memref<2x32xf32, #tpu.memory_space<vmem>>, vector<2x32xf32>
    %c0_1 = arith.constant 0 : index
    %c0_2 = arith.constant 0 : index
    %1 = vector.load %arg1[%c0_1, %c0_2] : memref<32x128xf32, #tpu.memory_space<vmem>>, vector<32x128xf32>
    %cst = arith.constant dense<0.000000e+00> : vector<2x128xf32>
    %2 = tpu.matmul %0, %1, %cst {dimension_numbers = #tpu.dot_dimension_numbers<[1], [0], [0], [1], [0, 0, 1, 1], [], []>} : vector<2x32xf32>, vector<32x128xf32>, vector<2x128xf32> -> vector<2x128xf32>
    %c0_3 = arith.constant 0 : index
    %c0_4 = arith.constant 0 : index
    %3 = vector.load %arg2[%c0_3, %c0_4] : memref<1x128xf32, #tpu.memory_space<vmem>>, vector<1x128xf32>
    %4 = vector.broadcast %3 : vector<1x128xf32> to vector<2x128xf32>
    %5 = arith.addf %2, %4 : vector<2x128xf32>
    %cst_5 = arith.constant 0.000000e+00 : f32
    %6 = vector.broadcast %cst_5 : f32 to vector<2x128xf32>
    %7 = arith.cmpf ogt, %5, %6 : vector<2x128xf32>
    %cst_6 = arith.constant 0.00999999977 : f32
    %8 = vector.broadcast %cst_6 : f32 to vector<2x128xf32>
    %9 = arith.mulf %8, %5 : vector<2x128xf32>
    %10 = arith.select %7, %5, %9 : vector<2x128xi1>, vector<2x128xf32>
    %c0_7 = arith.constant 0 : index
    %c0_8 = arith.constant 0 : index
    %11 = vector.load %arg3[%c0_7, %c0_8] : memref<128x128xf32, #tpu.memory_space<vmem>>, vector<128x128xf32>
    %cst_9 = arith.constant dense<0.000000e+00> : vector<2x128xf32>
    %12 = tpu.matmul %10, %11, %cst_9 {dimension_numbers = #tpu.dot_dimension_numbers<[1], [0], [0], [1], [0, 0, 1, 1], [], []>} : vector<2x128xf32>, vector<128x128xf32>, vector<2x128xf32> -> vector<2x128xf32>
    %13 = arith.mulf %10, %10 : vector<2x128xf32>
    %cst_10 = arith.constant dense<0.000000e+00> : vector<2x128xf32>
    %14 = tpu.matmul %13, %11, %cst_10 {dimension_numbers = #tpu.dot_dimension_numbers<[1], [0], [0], [1], [0, 0, 1, 1], [], []>} : vector<2x128xf32>, vector<128x128xf32>, vector<2x128xf32> -> vector<2x128xf32>
    %15 = arith.mulf %12, %12 : vector<2x128xf32>
    %16 = arith.subf %14, %15 : vector<2x128xf32>
    %17 = arith.subf %10, %12 : vector<2x128xf32>
    %cst_11 = arith.constant 9.99999974E-6 : f32
    %18 = vector.broadcast %cst_11 : f32 to vector<2x128xf32>
    %19 = arith.addf %16, %18 : vector<2x128xf32>
    %20 = math.rsqrt %19 : vector<2x128xf32>
    %21 = arith.mulf %17, %20 : vector<2x128xf32>
    %c0_12 = arith.constant 0 : index
    %c0_13 = arith.constant 0 : index
    %22 = vector.load %arg4[%c0_12, %c0_13] : memref<128x64xf32, #tpu.memory_space<vmem>>, vector<128x64xf32>
    %cst_14 = arith.constant dense<0.000000e+00> : vector<2x64xf32>
    %23 = tpu.matmul %21, %22, %cst_14 {dimension_numbers = #tpu.dot_dimension_numbers<[1], [0], [0], [1], [0, 0, 1, 1], [], []>} : vector<2x128xf32>, vector<128x64xf32>, vector<2x64xf32> -> vector<2x64xf32>
    %c0_15 = arith.constant 0 : index
    %c0_16 = arith.constant 0 : index
    %24 = vector.load %arg5[%c0_15, %c0_16] : memref<1x64xf32, #tpu.memory_space<vmem>>, vector<1x64xf32>
    %25 = vector.broadcast %24 : vector<1x64xf32> to vector<2x64xf32>
    %26 = arith.addf %23, %25 : vector<2x64xf32>
    %cst_17 = arith.constant 0.000000e+00 : f32
    %27 = vector.broadcast %cst_17 : f32 to vector<2x64xf32>
    %28 = arith.cmpf ogt, %26, %27 : vector<2x64xf32>
    %cst_18 = arith.constant 0.00999999977 : f32
    %29 = vector.broadcast %cst_18 : f32 to vector<2x64xf32>
    %30 = arith.mulf %29, %26 : vector<2x64xf32>
    %31 = arith.select %28, %26, %30 : vector<2x64xi1>, vector<2x64xf32>
    %c0_19 = arith.constant 0 : index
    %c0_20 = arith.constant 0 : index
    %32 = vector.load %arg6[%c0_19, %c0_20] : memref<64x64xf32, #tpu.memory_space<vmem>>, vector<64x64xf32>
    %cst_21 = arith.constant dense<0.000000e+00> : vector<2x64xf32>
    %33 = tpu.matmul %31, %32, %cst_21 {dimension_numbers = #tpu.dot_dimension_numbers<[1], [0], [0], [1], [0, 0, 1, 1], [], []>} : vector<2x64xf32>, vector<64x64xf32>, vector<2x64xf32> -> vector<2x64xf32>
    %34 = arith.mulf %31, %31 : vector<2x64xf32>
    %cst_22 = arith.constant dense<0.000000e+00> : vector<2x64xf32>
    %35 = tpu.matmul %34, %32, %cst_22 {dimension_numbers = #tpu.dot_dimension_numbers<[1], [0], [0], [1], [0, 0, 1, 1], [], []>} : vector<2x64xf32>, vector<64x64xf32>, vector<2x64xf32> -> vector<2x64xf32>
    %36 = arith.mulf %33, %33 : vector<2x64xf32>
    %37 = arith.subf %35, %36 : vector<2x64xf32>
    %38 = arith.subf %31, %33 : vector<2x64xf32>
    %cst_23 = arith.constant 9.99999974E-6 : f32
    %39 = vector.broadcast %cst_23 : f32 to vector<2x64xf32>
    %40 = arith.addf %37, %39 : vector<2x64xf32>
    %41 = math.rsqrt %40 : vector<2x64xf32>
    %42 = arith.mulf %38, %41 : vector<2x64xf32>
    %c0_24 = arith.constant 0 : index
    %c0_25 = arith.constant 0 : index
    %43 = vector.load %arg7[%c0_24, %c0_25] : memref<64x32xf32, #tpu.memory_space<vmem>>, vector<64x32xf32>
    %cst_26 = arith.constant dense<0.000000e+00> : vector<2x32xf32>
    %44 = tpu.matmul %42, %43, %cst_26 {dimension_numbers = #tpu.dot_dimension_numbers<[1], [0], [0], [1], [0, 0, 1, 1], [], []>} : vector<2x64xf32>, vector<64x32xf32>, vector<2x32xf32> -> vector<2x32xf32>
    %c0_27 = arith.constant 0 : index
    %c0_28 = arith.constant 0 : index
    %45 = vector.load %arg8[%c0_27, %c0_28] : memref<1x32xf32, #tpu.memory_space<vmem>>, vector<1x32xf32>
    %46 = vector.broadcast %45 : vector<1x32xf32> to vector<2x32xf32>
    %47 = arith.addf %44, %46 : vector<2x32xf32>
    %48 = arith.negf %47 : vector<2x32xf32>
    %49 = math.exp %48 : vector<2x32xf32>
    %cst_29 = arith.constant 1.000000e+00 : f32
    %50 = vector.broadcast %cst_29 : f32 to vector<2x32xf32>
    %51 = arith.addf %50, %49 : vector<2x32xf32>
    %52 = arith.divf %50, %51 : vector<2x32xf32>
    %c0_30 = arith.constant 0 : index
    %c0_31 = arith.constant 0 : index
    %53 = vector.load %arg9[%c0_30, %c0_31] : memref<2x32xf32, #tpu.memory_space<vmem>>, vector<2x32xf32>
    tpu.vector_store %arg9[%c0_30, %c0_31], %52 {strides = array<i32>} : memref<2x32xf32, #tpu.memory_space<vmem>>, vector<2x32xf32>,
    return
  }
}

</mosaic_0001>

<bundles_post_ra>
// kernel: tpu_custom_call.1
= control target key start
LH: loop header
LB: loop body
LE: loop exit
PB: predicated region body
PF: predicated region fallthrough
CT: control target
= control target key end

     0   :  { %v1067_v3 = vmov 0.0|0.0   ;;  %vm1068_vm0 = vmmov 0   ;;  %v1069_v6 = vmov 0.0   ;;  %s1362_s0 = inlined_call_operand.vmem [shape: f32[2,32], index: 0, kind: input, shape index: {}]   ;;  %s1363_s1 = inlined_call_operand.vmem [shape: f32[32,128], index: 1, kind: input, shape index: {}]   ;;  %s1364_s2 = inlined_call_operand.vmem [shape: f32[1,128], index: 2, kind: input, shape index: {}]   ;;  %s1365_s3 = inlined_call_operand.vmem [shape: f32[128,128], index: 3, kind: input, shape index: {}]   ;;  %s1366_s4 = inlined_call_operand.vmem [shape: f32[128,64], index: 4, kind: input, shape index: {}]   ;;  %s1367_s5 = inlined_call_operand.vmem [shape: f32[1,64], index: 5, kind: input, shape index: {}]   ;;  %s1368_s6 = inlined_call_operand.vmem [shape: f32[64,64], index: 6, kind: input, shape index: {}]   ;;  %s1369_s7 = inlined_call_operand.vmem [shape: f32[64,32], index: 7, kind: input, shape index: {}]   ;;  %s1370_s8 = inlined_call_operand.vmem [shape: f32[1,32], index: 8, kind: input, shape index: {}]   ;;  %s1371_s9 = inlined_call_operand.hbm [shape: f32[2,32], index: 9, kind: output, shape index: {}]  }
   0x1   :  { %v34_v0 = vld [vmem:[%s1363_s1] sm:$0xff]  ;;  %v35_v1 = vld [vmem:[%s1363_s1 + $0x8] sm:$0xff]  ;;  %v36_v2 = vld [vmem:[%s1363_s1 + $0x10] sm:$0xff]  ;;  %917 = vmatprep.subr.bf16.mxu0 %v1067_v3  ;;  %752 = vmatprep.mubr.msk.f32.mxu0 %vm1068_vm0, %v1069_v6 }
   0x2   :  { %v918_v4 = vpack.c.bf16 %v35_v1, %v34_v0  ;;  %v37_v5 = vld [vmem:[%s1363_s1 + $0x18] sm:$0xff]  ;;  %v122_v7 = vld [vmem:[%s1365_s3] sm:$0xff]  ;;  %923 = vmatprep.subr.bf16.mxu1 %v1067_v3  ;;  %v123_v8 = vld [vmem:[%s1365_s3 + $0x8] sm:$0xff]  ;;  %787 = vmatprep.mubr.msk.f32.mxu1 %vm1068_vm0, %v1069_v6 }
   0x3   :  { %v124_v9 = vld [vmem:[%s1365_s3 + $0x10] sm:$0xff]  ;;  %v125_v10 = vld [vmem:[%s1365_s3 + $0x18] sm:$0xff]  ;;  %v921_v11 = vpack.c.bf16 %v37_v5, %v36_v2  ;;  %v924_v12 = vpack.c.bf16 %v123_v8, %v122_v7  ;;  %v126_v14 = vld [vmem:[%s1365_s3 + $0x20] sm:$0xff] }
   0x4   :  { %919 = vmatpush3.bf16.msra.mxu0 %v918_v4  ;;  %v927_v13 = vpack.c.bf16 %v125_v10, %v124_v9  ;;  %v127_v15 = vld [vmem:[%s1365_s3 + $0x28] sm:$0xff] }
   0x5   :  { %920 = vmatprep.subr.bf16.mxu0 %v1067_v3  ;;  %925 = vmatpush3.bf16.msra.mxu1 %v924_v12 }
   0x6   :  { %926 = vmatprep.subr.bf16.mxu1 %v1067_v3 }
   0x7   :  { %14 = vsyncpa [#allocation3], 0  ;;  %v33_v16 = vld [vmem:[%s1362_s0] sm:$0x3]  ;;  %vm45_vm1 = vcmask 261120   ;;  %v930_v17 = vpack.c.bf16 %v127_v15, %v126_v14  ;;  %v128_v18 = vld [vmem:[%s1365_s3 + $0x30] sm:$0xff] }
   0x8   :  { %922 = vmatpush3.bf16.msra.mxu0 %v921_v11  ;;  %v129_v19 = vld [vmem:[%s1365_s3 + $0x38] sm:$0xff]  ;;  %v130_v21 = vld [vmem:[%s1365_s3 + $0x40] sm:$0xff]  ;;  %v131_v22 = vld [vmem:[%s1365_s3 + $0x48] sm:$0xff]  ;;  %vm389_vm4 = vcmask 523264   ;;  %s1070_s18 = smov [#allocation2]   ;;  %vm637_vm5 = vcmask 254976  }
   0x9   :  { %947 = vmatprep.subr.bf16.mxu0 %v1067_v3  ;;  %928 = vmatpush3.bf16.msra.mxu1 %v927_v13  ;;  %v933_v20 = vpack.c.bf16 %v129_v19, %v128_v18  ;;  %v936_v23 = vpack.c.bf16 %v131_v22, %v130_v21  ;;  %v132_v24 = vld [vmem:[%s1365_s3 + $0x50] sm:$0xff]  ;;  %v133_v25 = vld [vmem:[%s1365_s3 + $0x58] sm:$0xff]  ;;  %v134_v27 = vld [vmem:[%s1365_s3 + $0x60] sm:$0xff]  ;;  %s645_s19 = sshll.u32 %s1070_s18, 4  ;;  %s646_s19 = int_to_ptr.vmem [resolvable:$true] %s645_s19 }
   0xa   :  { %929 = vmatprep.subr.bf16.mxu1 %v1067_v3  ;;  %v939_v26 = vpack.c.bf16 %v133_v25, %v132_v24  ;;  %v135_v28 = vld [vmem:[%s1365_s3 + $0x68] sm:$0xff]  ;;  %v136_v30 = vld [vmem:[%s1365_s3 + $0x70] sm:$0xff]  ;;  %v137_v31 = vld [vmem:[%s1365_s3 + $0x78] sm:$0xff]  ;;  %s1043_s20 = scalar_lea.vmem %s646_s19, 32  ;;  %p1048_p1 = scmp.lt.s32.totalorder %s646_s19, %s646_s19 }
   0xb   :  { %753 = vmatmul.mubr.msk.f32.vlgmr.msra.gmra.mrb[0].mxu0 %vm45_vm1, %v33_v16  ;;  %v942_v29 = vpack.c.bf16 %v135_v28, %v134_v27  ;;  %v945_v32 = vpack.c.bf16 %v137_v31, %v136_v30  ;;  %v653_v33 = vld [vmem:[%s1364_s2] ss:$0 sm:$0xff]  ;;  %v286_v36 = vld [vmem:[%s1366_s4 + $0x8] sm:$0xff]  ;;  %v287_v41 = vld [vmem:[%s1366_s4 + $0x10] sm:$0xff]  ;;  %p1044_p0 = scmp.ne.s32.totalorder %s646_s19, %s1043_s20  ;;  %p1049_p2 = scmp.lt.s32.totalorder %s1043_s20, %s1043_s20 }
   0xc   :  { %949 = vmatpush3.bf16.msra.mxu0 %v924_v12  ;;  %822 = vmatprep.mubr.msk.f32.mxu0 %vm1068_vm0, %v1069_v6  ;;  %v285_v35 = vld [vmem:[%s1366_s4] sm:$0xff]  ;;  %v288_v42 = vld [vmem:[%s1366_s4 + $0x18] sm:$0xff]  ;;  %v290_v47 = vld [vmem:[%s1366_s4 + $0x28] sm:$0xff] }
   0xd   :  { %950 = vmatprep.subr.bf16.mxu0 %v1067_v3  ;;  %931 = vmatpush3.bf16.msra.mxu1 %v930_v17  ;;  %v972_v40 = vpack.c.bf16 %v286_v36, %v285_v35  ;;  %v975_v45 = vpack.c.bf16 %v288_v42, %v287_v41  ;;  %v289_v46 = vld [vmem:[%s1366_s4 + $0x20] sm:$0xff]  ;;  %v291_v49 = vld [vmem:[%s1366_s4 + $0x30] sm:$0xff]  ;;  %v292_v50 = vld [vmem:[%s1366_s4 + $0x38] sm:$0xff]  ;;  %p1050_p3 = por %p1049_p2, %p1048_p1 }
   0xe   :  { %932 = vmatprep.subr.bf16.mxu1 %v1067_v3  ;;  %v978_v48 = vpack.c.bf16 %v290_v47, %v289_v46  ;;  %v981_v51 = vpack.c.bf16 %v292_v50, %v291_v49  ;;  %v293_v52 = vld [vmem:[%s1366_s4 + $0x40] sm:$0xff]  ;;  %v294_v53 = vld [vmem:[%s1366_s4 + $0x48] sm:$0xff]  ;;  %v295_v55 = vld [vmem:[%s1366_s4 + $0x50] sm:$0xff] }
   0xf   :  { %v984_v54 = vpack.c.bf16 %v294_v53, %v293_v52  ;;  %v296_v56 = vld [vmem:[%s1366_s4 + $0x58] sm:$0xff]  ;;  %v297_v58 = vld [vmem:[%s1366_s4 + $0x60] sm:$0xff]  ;;  %v298_v59 = vld [vmem:[%s1366_s4 + $0x68] sm:$0xff]  ;;  %p1051_p4 = pnand %p1050_p3, %p1044_p0 }
  0x10   :  { %952 = vmatpush3.bf16.msra.mxu0 %v927_v13  ;;  %v987_v57 = vpack.c.bf16 %v296_v56, %v295_v55  ;;  %v990_v60 = vpack.c.bf16 %v298_v59, %v297_v58  ;;  %v299_v61 = vld [vmem:[%s1366_s4 + $0x70] sm:$0xff]  ;;  %v300_v62 = vld [vmem:[%s1366_s4 + $0x78] sm:$0xff]  ;;  %v381_v0 = vld [vmem:[%s1368_s6] sm:$0xff] }
  0x11   :  { %953 = vmatprep.subr.bf16.mxu0 %v1067_v3  ;;  %934 = vmatpush3.bf16.msra.mxu1 %v933_v20  ;;  %v993_v63 = vpack.c.bf16 %v300_v62, %v299_v61  ;;  %v382_v1 = vld [vmem:[%s1368_s6 + $0x8] sm:$0xff]  ;;  %v383_v2 = vld [vmem:[%s1368_s6 + $0x10] sm:$0xff]  ;;  %v384_v5 = vld [vmem:[%s1368_s6 + $0x18] sm:$0xff] }
  0x12   :  { %935 = vmatprep.subr.bf16.mxu1 %v1067_v3  ;;  %v996_v4 = vpack.c.bf16 %v382_v1, %v381_v0  ;;  %v999_v7 = vpack.c.bf16 %v384_v5, %v383_v2  ;;  %v385_v8 = vld [vmem:[%s1368_s6 + $0x20] sm:$0xff]  ;;  %v386_v9 = vld [vmem:[%s1368_s6 + $0x28] sm:$0xff]  ;;  %v387_v21 = vld [vmem:[%s1368_s6 + $0x30] sm:$0xff] }
  0x13   :  { %v1002_v10 = vpack.c.bf16 %v386_v9, %v385_v8  ;;  %v388_v22 = vld [vmem:[%s1368_s6 + $0x38] sm:$0xff]  ;;  %v655_v24 = vld [vmem:[%s1367_s5] ss:$0 sm:$0xff] }
  0x14   :  { %955 = vmatpush3.bf16.msra.mxu0 %v930_v17  ;;  %v543_v31 = vld [vmem:[%s1369_s7] sm:$0xff] }
  0x15   :  { %956 = vmatprep.subr.bf16.mxu0 %v1067_v3  ;;  %937 = vmatpush3.bf16.msra.mxu1 %v936_v23  ;;  %v547_v36 = vld [vmem:[%s1369_s7 + $0x20] sm:$0xff] }
  0x16   :  { %938 = vmatprep.subr.bf16.mxu1 %v1067_v3  ;;  %v658_v52 = vld [vmem:[%s1370_s8] ss:$0 sm:$0xff] }
  0x18   :  { %958 = vmatpush3.bf16.msra.mxu0 %v933_v20 }
  0x19   :  { %959 = vmatprep.subr.bf16.mxu0 %v1067_v3  ;;  %940 = vmatpush3.bf16.msra.mxu1 %v939_v26 }
  0x1a   :  { %941 = vmatprep.subr.bf16.mxu1 %v1067_v3 }
  0x1c   :  { %961 = vmatpush3.bf16.msra.mxu0 %v936_v23  ;;  %v1005_v23 = vpack.c.bf16 %v388_v22, %v387_v21 }
  0x1d   :  { %962 = vmatprep.subr.bf16.mxu0 %v1067_v3  ;;  %943 = vmatpush3.bf16.msra.mxu1 %v942_v29 }
  0x1e   :  { %944 = vmatprep.subr.bf16.mxu1 %v1067_v3 }
  0x20   :  { %964 = vmatpush3.bf16.msra.mxu0 %v939_v26 }
  0x21   :  { %965 = vmatprep.subr.bf16.mxu0 %v1067_v3  ;;  %946 = vmatpush3.bf16.msra.mxu1 %v945_v32 }
  0x22   :  { %971 = vmatprep.subr.bf16.mxu1 %v1067_v3 }
  0x24   :  { %967 = vmatpush3.bf16.msra.mxu0 %v942_v29 }
  0x25   :  { %968 = vmatprep.subr.bf16.mxu0 %v1067_v3 }
  0x28   :  { %970 = vmatpush3.bf16.msra.mxu0 %v945_v32 }
  0x29   :  { %995 = vmatprep.subr.bf16.mxu0 %v1067_v3 }
  0xde   :  { %v115_v34 = vpop.f32.mrb[0].mxu0 }
  0xdf   :  { %v116_v37 = vadd.f32 %v653_v33, %v115_v34  ;;  %v754_v38 = vpop.f32.mrb[1].mxu0  ;;  %v545_v33 = vld [vmem:[%s1369_s7 + $0x10] sm:$0xff]  ;;  %v546_v34 = vld [vmem:[%s1369_s7 + $0x18] sm:$0xff] }
  0xe0   :  { %v1023_v35 = vpack.c.bf16 %v546_v34, %v545_v33 }
  0xe1   :  { %v120_v39 = vmul.f32 0.01, %v116_v37  ;;  %vm119_vm2 = vcmp.gt.f32.partialorder %v116_v37, 0.0 }
  0xe3   :  { %v1225_v43 = vsel %vm119_vm2, %v116_v37, %v120_v39  ;;  %v548_v37 = vld [vmem:[%s1369_s7 + $0x28] sm:$0xff]  ;;  %v549_v39 = vld [vmem:[%s1369_s7 + $0x30] sm:$0xff] }
  0xe4   :  { %788 = vmatmul.mubr.f32.vlgmr.msra.gmra.mrb[0].mxu1 %v1225_v43  ;;  %v208_v44 = vmul.f32 %v1225_v43, %v1225_v43  ;;  %v1026_v38 = vpack.c.bf16 %v548_v37, %v547_v36 }
  0xe5   :  { %973 = vmatpush3.bf16.msra.mxu1 %v972_v40  ;;  %857 = vmatprep.mubr.msk.f32.mxu1 %vm1068_vm0, %v1069_v6  ;;  %v550_v40 = vld [vmem:[%s1369_s7 + $0x38] sm:$0xff] }
  0xe6   :  { %823 = vmatmul.mubr.f32.vlgmr.msra.gmra.mrb[2].mxu0 %v208_v44  ;;  %974 = vmatprep.subr.bf16.mxu1 %v1067_v3  ;;  %v1029_v41 = vpack.c.bf16 %v550_v40, %v549_v39 }
  0xe7   :  { %876 = vmatprep.mubr.msk.f32.mxu0 %vm1068_vm0, %v1069_v6  ;;  %997 = vmatpush3.bf16.msra.mxu0 %v996_v4 }
  0xe8   :  { %998 = vmatprep.subr.bf16.mxu0 %v1067_v3 }
  0xe9   :  { %976 = vmatpush3.bf16.msra.mxu1 %v975_v45 }
  0xea   :  { %977 = vmatprep.subr.bf16.mxu1 %v1067_v3 }
  0xeb   :  { %1000 = vmatpush3.bf16.msra.mxu0 %v999_v7 }
  0xec   :  { %1001 = vmatprep.subr.bf16.mxu0 %v1067_v3 }
  0xed   :  { %979 = vmatpush3.bf16.msra.mxu1 %v978_v48 }
  0xee   :  { %980 = vmatprep.subr.bf16.mxu1 %v1067_v3 }
  0xef   :  { %1003 = vmatpush3.bf16.msra.mxu0 %v1002_v10 }
  0xf0   :  { %1004 = vmatprep.subr.bf16.mxu0 %v1067_v3 }
  0xf1   :  { %982 = vmatpush3.bf16.msra.mxu1 %v981_v51 }
  0xf2   :  { %983 = vmatprep.subr.bf16.mxu1 %v1067_v3 }
  0xf3   :  { %1006 = vmatpush3.bf16.msra.mxu0 %v1005_v23 }
  0xf4   :  { %1007 = vmatprep.subr.bf16.mxu0 %v1067_v3 }
  0xf5   :  { %985 = vmatpush3.bf16.msra.mxu1 %v984_v54 }
  0xf6   :  { %986 = vmatprep.subr.bf16.mxu1 %v1067_v3 }
  0xf9   :  { %988 = vmatpush3.bf16.msra.mxu1 %v987_v57 }
  0xfa   :  { %989 = vmatprep.subr.bf16.mxu1 %v1067_v3 }
  0xfd   :  { %991 = vmatpush3.bf16.msra.mxu1 %v990_v60 }
  0xfe   :  { %992 = vmatprep.subr.bf16.mxu1 %v1067_v3 }
 0x101   :  { %994 = vmatpush3.bf16.msra.mxu1 %v993_v63 }
 0x102   :  { %1019 = vmatprep.subr.bf16.mxu1 %v1067_v3 }
 0x1b7   :  { %v204_v11 = vpop.f32.mrb[0].mxu1 }
 0x1b8   :  { %v279_v12 = vmul.f32 %v204_v11, %v204_v11  ;;  %v789_v13 = vpop.f32.mrb[1].mxu1  ;;  %v281_v18 = vsub.f32 %v1225_v43, %v204_v11 }
 0x1b9   :  { %v275_v14 = vpop.f32.mrb[2].mxu0 }
 0x1ba   :  { %v280_v15 = vsub.f32 %v275_v14, %v279_v12  ;;  %v824_v16 = vpop.f32.mrb[3].mxu0 }
 0x1bc   :  { %v282_v17 = vadd.f32 1e-05, %v280_v15 }
 0x1be   :  { %1035 = vrsqrt.f32 %v282_v17 }
 0x1c8   :  { %v1036_v19 = vpop.eup %1035 }
 0x1c9   :  { %v284_v20 = vmul.f32 %v1036_v19, %v281_v18 }
 0x1cb   :  { %858 = vmatmul.mubr.f32.vlgmr.msra.gmra.mrb[2].mxu1 %v284_v20 }
 0x1cc   :  { %914 = vmatprep.mubr.msk.f32.mxu1 %vm1068_vm0, %v1069_v6 }
 0x29e   :  { %v374_v25 = vpop.f32.mrb[2].mxu1 }
 0x29f   :  { %v375_v26 = vadd.f32 %v655_v24, %v374_v25  ;;  %v859_v27 = vpop.f32.mrb[3].mxu1 }
 0x2a1   :  { %vm378_vm3 = vcmp.gt.f32.partialorder %v375_v26, 0.0  ;;  %v379_v28 = vmul.f32 0.01, %v375_v26 }
 0x2a3   :  { %v380_v29 = vsel %vm378_vm3, %v375_v26, %v379_v28 }
 0x2a4   :  { %877 = vmatmul.mubr.msk.f32.vlgmr.msra.gmra.mrb[4].mxu0 %vm389_vm4, %v380_v29  ;;  %v463_v30 = vmul.f32 %v380_v29, %v380_v29 }
 0x2a5   :  { %1009 = vmatpush3.bf16.msra.mxu0 %v996_v4  ;;  %895 = vmatprep.mubr.msk.f32.mxu0 %vm1068_vm0, %v1069_v6  ;;  %v544_v6 = vld [vmem:[%s1369_s7 + $0x8] sm:$0xff] }
 0x2a6   :  { %1010 = vmatprep.subr.bf16.mxu0 %v1067_v3  ;;  %v1020_v32 = vpack.c.bf16 %v544_v6, %v543_v31 }
 0x2a8   :  { %1021 = vmatpush3.bf16.msra.mxu1 %v1020_v32 }
 0x2a9   :  { %1012 = vmatpush3.bf16.msra.mxu0 %v999_v7  ;;  %1022 = vmatprep.subr.bf16.mxu1 %v1067_v3 }
 0x2aa   :  { %1013 = vmatprep.subr.bf16.mxu0 %v1067_v3 }
 0x2ac   :  { %1024 = vmatpush3.bf16.msra.mxu1 %v1023_v35 }
 0x2ad   :  { %1015 = vmatpush3.bf16.msra.mxu0 %v1002_v10  ;;  %1025 = vmatprep.subr.bf16.mxu1 %v1067_v3 }
 0x2ae   :  { %1016 = vmatprep.subr.bf16.mxu0 %v1067_v3 }
 0x2b0   :  { %1027 = vmatpush3.bf16.msra.mxu1 %v1026_v38 }
 0x2b1   :  { %1018 = vmatpush3.bf16.msra.mxu0 %v1005_v23  ;;  %1028 = vmatprep.subr.bf16.mxu1 %v1067_v3 }
 0x2b4   :  { %896 = vmatmul.mubr.msk.f32.vlgmr.msra.gmra.mrb[6].mxu0 %vm389_vm4, %v463_v30  ;;  %1030 = vmatpush3.bf16.msra.mxu1 %v1029_v41 }
 0x377   :  { %v459_v42 = vpop.f32.mrb[4].mxu0 }
 0x378   :  { %v878_v43 = vpop.f32.mrb[5].mxu0  ;;  %v537_v44 = vmul.f32 %v459_v42, %v459_v42  ;;  %v539_v49 = vsub.f32 %v380_v29, %v459_v42 }
 0x387   :  { %v533_v45 = vpop.f32.mrb[6].mxu0 }
 0x388   :  { %v538_v46 = vsub.f32 %v533_v45, %v537_v44  ;;  %v897_v47 = vpop.f32.mrb[7].mxu0 }
 0x38a   :  { %v540_v48 = vadd.f32 1e-05, %v538_v46 }
 0x38c   :  { %1037 = vrsqrt.f32 %v540_v48 }
 0x396   :  { %v1038_v50 = vpop.eup %1037 }
 0x397   :  { %v542_v51 = vmul.f32 %v1038_v50, %v539_v49 }
 0x399   :  { %915 = vmatmul.mubr.msk.f32.vlgmr.msra.gmra.mrb[4].mxu1 %vm389_vm4, %v542_v51 }
 0x46c   :  { %v627_v53 = vpop.f32.mrb[4].mxu1 }
 0x46d   :  { %v628_v3 = vadd.f32 %v658_v52, %v627_v53  ;;  %v916_v54 = vpop.f32.mrb[5].mxu1 }
 0x46f   :  { %v660_v55 = vmul.f32 -1.442695, %v628_v3 }
 0x471   :  { %1039 = vpow2.f32 %v660_v55 }
 0x47b   :  { %v1040_v56 = vpop.eup %1039 }
 0x47c   :  { %v634_v57 = vadd.f32 1.0, %v1040_v56 }
 0x47e   :  { %1041 = vrcp.f32 %v634_v57 }
 0x488   :  { %v1042_v58 = vpop.eup %1041 }
 0x489   :  { %638 = vst.msk [vmem:[#allocation2] sm:$0x3] %vm637_vm5, %v1042_v58 }
 0x48a   :  { %1054 = shalt.err (!%p1051_p4)
}
 0x48b   :  { %s1055_s22 = scalar_lea.hbm %s1371_s9, 32 }
 0x48c   :  { %p1056_p5 = scmp.ne.s32.totalorder %s1371_s9, %s1055_s22  ;;  %p1059_p6 = scmp.lt.u32.totalorder %s1055_s22, %s1371_s9 }
 0x48e   :  { %p1061_p7 = pnand %p1059_p6, %p1056_p5 }
 0x490   :  { %1064 = shalt.err (!%p1061_p7)
}
 0x491   :  { %648 = dma.vmem_to_hbm [thread:$0]  %s646_s19, 32, %s1371_s9, [#allocation3]  }
 0x492   :  { %1065 = dma.done.wait [#allocation3], 32  }
 0x493   :  { %1066 = vsyncadd [#allocation3], 4294967264 }
 0x494   :  { %652 = vsyncpa [#allocation3], 1 }

</bundles_post_ra>
